<compile_context>
chip_gen: v6e
topology: v6e:2x2x1
jax: 0.10.0
libtpu: 0.0.40
codegen_flags: <defaults>
</compile_context>

<pallas_src>
import functools

import jax
import jax.numpy as jnp
import numpy as np
from jax.experimental import pallas as pl
from jax.experimental.pallas import tpu as pltpu


def _num_tensorcores():
    """Best-effort TensorCore count of device 0 (v7x has 2/chip). Falls back
    to 1 (no step-count adjustment) if the attribute is unavailable."""
    try:
        dev = jax.devices()[0]
        for attr in ("num_cores", "core_count", "num_tensorcores"):
            v = getattr(dev, attr, None)
            if isinstance(v, int) and v > 0:
                return v
    except Exception:
        pass
    return 1


def _mlp_kernel(x_ref, p_ref, w2_ref, o_ref, *, hidden, ct, n_chunks, bf16_matmul):
    # Resident packed params: cols 0=w1 (fc1.w), 1=b1, 2=b2, 3=w3 (fc3.w.T), [0,4]=b3.
    w1 = p_ref[:, 0:1]                         # (H, 1)
    b1 = p_ref[:, 1:2]                         # (H, 1)
    b2 = p_ref[:, 2:3]                         # (H, 1)
    w3 = p_ref[:, 3:4]                         # (H, 1)
    b3 = p_ref[0:1, 4:5]                       # (1, 1)

    w2 = w2_ref[...]                           # (H, H) fc2.weight [out, in]
    if bf16_matmul:
        w2 = w2.astype(jnp.bfloat16)           # cast once per grid step

    # Hoist lane-broadcasts out of the chunk loop (JAX does not CSE
    # broadcast_in_dim; re-emitting them per chunk is pure VPU filler).
    w1b = jnp.broadcast_to(w1, (hidden, ct))
    b1b = jnp.broadcast_to(b1, (hidden, ct))
    b2b = jnp.broadcast_to(b2, (hidden, ct))
    w3b = jnp.broadcast_to(w3, (hidden, ct))

    def chunk(c):
        if isinstance(c, int):                 # single-chunk / static path
            off = c * ct
        else:
            off = pl.multiple_of(c * ct, ct)
        x_c = x_ref[:, pl.ds(off, ct)]                       # (1, ct) lane-dense load

        # Layer 1 (K=1): outer product on the VPU (f32).
        h1 = jnp.maximum(w1b * x_c + b1b, 0.0)               # (H, ct)

        # Layer 2: the only real matmul -> MXU, f32 accumulate.
        rhs = h1.astype(jnp.bfloat16) if bf16_matmul else h1
        h2 = jnp.dot(w2, rhs, preferred_element_type=jnp.float32) + b2b
        h2 = jnp.maximum(h2, 0.0)                            # (H, ct)

        # Layer 3 (N=1): per-column dot -> VPU multiply + sublane reduce (f32).
        out_c = jnp.sum(h2 * w3b, axis=0, keepdims=True) + b3    # (1, ct)
        o_ref[:, pl.ds(off, ct)] = out_c.astype(o_ref.dtype)     # lane-dense store

    if n_chunks == 1:
        chunk(0)
    else:
        def body(c, carry):
            chunk(c)
            return carry
        jax.lax.fori_loop(0, n_chunks, body, 0, unroll=(n_chunks <= 8))


def mlp_forward(x, params, *, batch_tile=32768, chunk=512, bf16_matmul=False):
    """x: [B, 1] float32.  params: dict from init_params (PyTorch layout)."""
    LANE = 128
    B, in_dim = x.shape
    assert in_dim == 1, "Net's fc1 has in_features=1"
    H = params["w2"].shape[0]
    O = params["w3"].shape[0]
    assert O == 1, "kernel specialized for output_size=1 (module default)"
    # TODO(synk): for output_size > 1 the last layer would go back to an MXU dot.

    def rup(a, m):
        return ((a + m - 1) // m) * m

    # ---- tile selection: pad instead of assert; even step count on multi-TC ----
    cores = _num_tensorcores()
    Bp = rup(B, LANE)
    bt = min(rup(max(min(batch_tile, 65536), LANE), LANE), Bp)   # VMEM-safe cap
    if cores > 1:
        per_core = max(LANE, rup(-(-Bp // cores), LANE))
        bt = min(bt, per_core)                 # >= `cores` steps so no TC idles
    ct = max(LANE, (min(chunk, bt) // LANE) * LANE)
    bt = rup(bt, ct)                           # bt is a multiple of the chunk
    steps = -(-Bp // bt)
    if cores > 1 and steps % cores:
        steps = rup(steps, cores)              # even multiple of TC count
    Bp = steps * bt
    n_chunks = bt // ct

    # ---- pack the five tiny params into ONE resident (H, 8) block ----
    packed = jnp.zeros((H, 8), jnp.float32)
    packed = packed.at[:, 0].set(params["w1"].reshape(H).astype(jnp.float32))
    packed = packed.at[:, 1].set(params["b1"].reshape(H).astype(jnp.float32))
    packed = packed.at[:, 2].set(params["b2"].reshape(H).astype(jnp.float32))
    packed = packed.at[:, 3].set(params["w3"].reshape(H).astype(jnp.float32))
    packed = packed.at[0, 4].set(params["b3"].astype(jnp.float32)[0])
    w2 = params["w2"].astype(jnp.float32)

    # Batch on the lane axis for lane-dense loads/stores; pad to the grid.
    x_row = x.astype(jnp.float32).reshape(1, B)
    if Bp > B:
        x_row = jnp.pad(x_row, ((0, 0), (0, Bp - B)))

    kernel = functools.partial(_mlp_kernel, hidden=H, ct=ct,
                               n_chunks=n_chunks, bf16_matmul=bf16_matmul)
    resident = lambda i: (0, 0)
    batched = lambda i: (0, i)

    def run(single_buffer_params):
        # Constant-index blocks don't need double-buffering.
        kw = dict(pipeline_mode=pl.Buffered(1)) if single_buffer_params else {}
        return pl.pallas_call(
            kernel,
            out_shape=jax.ShapeDtypeStruct((1, Bp), jnp.float32),
            grid_spec=pltpu.PrefetchScalarGridSpec(
                num_scalar_prefetch=0,
                grid=(steps,),
                in_specs=[
                    pl.BlockSpec((1, bt), batched),          # x, batch on lanes
                    pl.BlockSpec((H, 8), resident, **kw),    # packed w1|b1|b2|w3|b3
                    pl.BlockSpec((H, H), resident, **kw),    # fc2.weight
                ],
                out_specs=pl.BlockSpec((1, bt), batched),
            ),
            compiler_params=pltpu.CompilerParams(
                dimension_semantics=("parallel",)),           # shard steps across TCs
        )(x_row, packed, w2)

    try:
        out_row = run(True)
    except Exception:
        out_row = run(False)   # fallback if pipeline_mode/Buffered(1) is rejected

    return out_row[:, :B].reshape(B, 1)


def init_params(key, n_hidden=32, output_size=1):
    """nn.Linear-style U(-1/sqrt(fan_in), +1/sqrt(fan_in)) init, PyTorch layout."""
    ks = jax.random.split(key, 6)

    def unif(k, shape, fan_in):
        bound = 1.0 / np.sqrt(fan_in)
        return jax.random.uniform(k, shape, jnp.float32, -bound, bound)

    return {
        "w1": unif(ks[0], (n_hidden, 1), 1),                  # fc1.weight
        "b1": unif(ks[1], (n_hidden,), 1),                    # fc1.bias
        "w2": unif(ks[2], (n_hidden, n_hidden), n_hidden),    # fc2.weight
        "b2": unif(ks[3], (n_hidden,), n_hidden),             # fc2.bias
        "w3": unif(ks[4], (output_size, n_hidden), n_hidden), # fc3.weight
        "b3": unif(ks[5], (output_size,), n_hidden),          # fc3.bias
    }


def mlp_reference(x, p):
    """Pure-JAX reference in the standard (batch-on-rows) layout."""
    h1 = jnp.maximum(x @ p["w1"].T + p["b1"], 0.0)            # [B,H]
    h2 = jnp.maximum(h1 @ p["w2"].T + p["b2"], 0.0)           # [B,H]
    return h2 @ p["w3"].T + p["b3"]                           # [B,1]


if __name__ == "__main__":
    key = jax.random.PRNGKey(0)
    k_param, k_x1, k_x2, k_x3 = jax.random.split(key, 4)

    H = 32
    params = init_params(k_param, n_hidden=H, output_size=1)

    # 1) Lane-aligned batch, default (large-tile, few-step) path.
    x1 = jax.random.normal(k_x1, (256, 1), jnp.float32)
    out1 = jax.block_until_ready(mlp_forward(x1, params))
    np.testing.assert_allclose(np.asarray(out1),
                               np.asarray(mlp_reference(x1, params)),
                               rtol=1e-5, atol=1e-5)
    assert out1.shape == (256, 1) and out1.dtype == jnp.float32

    # 2) Non-lane-aligned batch -> exercises the pad-and-slice path.
    x2 = jax.random.normal(k_x2, (200, 1), jnp.float32)
    out2 = jax.block_until_ready(mlp_forward(x2, params))
    np.testing.assert_allclose(np.asarray(out2),
                               np.asarray(mlp_reference(x2, params)),
                               rtol=1e-5, atol=1e-5)

    # 3) Multi-step grid + in-kernel lane-chunk loop.
    x3 = jax.random.normal(k_x3, (1024, 1), jnp.float32)
    out3 = jax.block_until_ready(mlp_forward(x3, params, batch_tile=512, chunk=128))
    np.testing.assert_allclose(np.asarray(out3),
                               np.asarray(mlp_reference(x3, params)),
                               rtol=1e-5, atol=1e-5)

    # 4) Opt-in bf16 MXU operands (f32 accumulate) -> looser tolerance.
    out4 = jax.block_until_ready(mlp_forward(x3, params, bf16_matmul=True))
    np.testing.assert_allclose(np.asarray(out4),
                               np.asarray(mlp_reference(x3, params)),
                               rtol=1e-1, atol=1e-1)

    print("KERNEL_OK")
</pallas_src>

<mosaic_0001>
module attributes {stable_mosaic.version = 11 : i64} {
  func.func @_mlp_kernel(%arg0: i32, %arg1: memref<1x256xf32, #tpu.memory_space<vmem>>, %arg2: memref<32x8xf32, #tpu.memory_space<vmem>>, %arg3: memref<32x32xf32, #tpu.memory_space<vmem>>, %arg4: memref<1x256xf32, #tpu.memory_space<vmem>>) attributes {dimension_semantics = [#tpu.dimension_semantics<parallel>], iteration_bounds = array<i64: 1>, scalar_prefetch = 0 : i64, scratch_operands = 0 : i64, tpu.core_type = #tpu.core_type<tc>, window_params = [{transform_indices = @transform_0, window_bounds = array<i64: 1, 256>}, {pipeline_mode = #tpu.pipeline_mode<synchronous>, transform_indices = @transform_1, window_bounds = array<i64: 32, 8>}, {pipeline_mode = #tpu.pipeline_mode<synchronous>, transform_indices = @transform_2, window_bounds = array<i64: 32, 32>}, {transform_indices = @transform_3, window_bounds = array<i64: 1, 256>}]} {
    %c0 = arith.constant 0 : index
    %c0_0 = arith.constant 0 : index
    %0 = vector.load %arg2[%c0, %c0_0] : memref<32x8xf32, #tpu.memory_space<vmem>>, vector<32x1xf32>
    %c0_1 = arith.constant 0 : index
    %c1 = arith.constant 1 : index
    %1 = vector.load %arg2[%c0_1, %c1] : memref<32x8xf32, #tpu.memory_space<vmem>>, vector<32x1xf32>
    %c0_2 = arith.constant 0 : index
    %c2 = arith.constant 2 : index
    %2 = vector.load %arg2[%c0_2, %c2] : memref<32x8xf32, #tpu.memory_space<vmem>>, vector<32x1xf32>
    %c0_3 = arith.constant 0 : index
    %c3 = arith.constant 3 : index
    %3 = vector.load %arg2[%c0_3, %c3] : memref<32x8xf32, #tpu.memory_space<vmem>>, vector<32x1xf32>
    %c0_4 = arith.constant 0 : index
    %c4 = arith.constant 4 : index
    %4 = vector.load %arg2[%c0_4, %c4] : memref<32x8xf32, #tpu.memory_space<vmem>>, vector<1x1xf32>
    %c0_5 = arith.constant 0 : index
    %c0_6 = arith.constant 0 : index
    %5 = vector.load %arg3[%c0_5, %c0_6] : memref<32x32xf32, #tpu.memory_space<vmem>>, vector<32x32xf32>
    %6 = vector.shape_cast %0 : vector<32x1xf32> to vector<32x1xf32>
    %7 = vector.broadcast %6 : vector<32x1xf32> to vector<32x256xf32>
    %8 = vector.shape_cast %1 : vector<32x1xf32> to vector<32x1xf32>
    %9 = vector.broadcast %8 : vector<32x1xf32> to vector<32x256xf32>
    %10 = vector.shape_cast %2 : vector<32x1xf32> to vector<32x1xf32>
    %11 = vector.broadcast %10 : vector<32x1xf32> to vector<32x256xf32>
    %12 = vector.shape_cast %3 : vector<32x1xf32> to vector<32x1xf32>
    %13 = vector.broadcast %12 : vector<32x1xf32> to vector<32x256xf32>
    %c0_7 = arith.constant 0 : index
    %c0_8 = arith.constant 0 : index
    %14 = vector.load %arg1[%c0_7, %c0_8] : memref<1x256xf32, #tpu.memory_space<vmem>>, vector<1x256xf32>
    %15 = vector.broadcast %14 : vector<1x256xf32> to vector<32x256xf32>
    %16 = arith.mulf %7, %15 : vector<32x256xf32>
    %17 = arith.addf %16, %9 : vector<32x256xf32>
    %cst = arith.constant 0.000000e+00 : f32
    %18 = vector.broadcast %cst : f32 to vector<32x256xf32>
    %19 = arith.maximumf %17, %18 : vector<32x256xf32>
    %cst_9 = arith.constant dense<0.000000e+00> : vector<32x256xf32>
    %20 = tpu.matmul %5, %19, %cst_9 {dimension_numbers = #tpu.dot_dimension_numbers<[1], [0], [0], [1], [0, 0, 1, 1], [], []>} : vector<32x32xf32>, vector<32x256xf32>, vector<32x256xf32> -> vector<32x256xf32>
    %21 = arith.addf %20, %11 : vector<32x256xf32>
    %cst_10 = arith.constant 0.000000e+00 : f32
    %22 = vector.broadcast %cst_10 : f32 to vector<32x256xf32>
    %23 = arith.maximumf %21, %22 : vector<32x256xf32>
    %24 = arith.mulf %23, %13 : vector<32x256xf32>
    %cst_11 = arith.constant dense<0.000000e+00> : vector<256xf32>
    %25 = vector.multi_reduction <add>, %24, %cst_11 [0] : vector<32x256xf32> to vector<256xf32>
    %26 = vector.shape_cast %25 : vector<256xf32> to vector<1x256xf32>
    %27 = vector.broadcast %4 : vector<1x1xf32> to vector<1x256xf32>
    %28 = arith.addf %26, %27 : vector<1x256xf32>
    %c0_12 = arith.constant 0 : index
    %c0_13 = arith.constant 0 : index
    %29 = vector.load %arg4[%c0_12, %c0_13] : memref<1x256xf32, #tpu.memory_space<vmem>>, vector<1x256xf32>
    tpu.vector_store %arg4[%c0_12, %c0_13], %28 {strides = array<i32>} : memref<1x256xf32, #tpu.memory_space<vmem>>, vector<1x256xf32>,
    return
  }
  func.func @transform_0(%arg0: i32) -> (i32, i32) {
    %c0_i32 = arith.constant 0 : i32
    %c0_i32_0 = arith.constant 0 : i32
    return %c0_i32, %arg0 : i32, i32
  }
  func.func @transform_1(%arg0: i32) -> (i32, i32) {
    %c0_i32 = arith.constant 0 : i32
    %c0_i32_0 = arith.constant 0 : i32
    %c0_i32_1 = arith.constant 0 : i32
    return %c0_i32, %c0_i32_0 : i32, i32
  }
  func.func @transform_2(%arg0: i32) -> (i32, i32) {
    %c0_i32 = arith.constant 0 : i32
    %c0_i32_0 = arith.constant 0 : i32
    %c0_i32_1 = arith.constant 0 : i32
    return %c0_i32, %c0_i32_0 : i32, i32
  }
  func.func @transform_3(%arg0: i32) -> (i32, i32) {
    %c0_i32 = arith.constant 0 : i32
    %c0_i32_0 = arith.constant 0 : i32
    return %c0_i32, %arg0 : i32, i32
  }
}

module attributes {stable_mosaic.version = 11 : i64} {
  func.func @_mlp_kernel(%arg0: i32, %arg1: memref<1x256xf32, #tpu.memory_space<vmem>>, %arg2: memref<32x8xf32, #tpu.memory_space<vmem>>, %arg3: memref<32x32xf32, #tpu.memory_space<vmem>>, %arg4: memref<1x256xf32, #tpu.memory_space<vmem>>) attributes {dimension_semantics = [#tpu.dimension_semantics<parallel>], iteration_bounds = array<i64: 1>, scalar_prefetch = 0 : i64, scratch_operands = 0 : i64, tpu.core_type = #tpu.core_type<tc>, window_params = [{transform_indices = @transform_0, window_bounds = array<i64: 1, 256>}, {pipeline_mode = #tpu.pipeline_mode<synchronous>, transform_indices = @transform_1, window_bounds = array<i64: 32, 8>}, {pipeline_mode = #tpu.pipeline_mode<synchronous>, transform_indices = @transform_2, window_bounds = array<i64: 32, 32>}, {transform_indices = @transform_3, window_bounds = array<i64: 1, 256>}]} {
    %c0 = arith.constant 0 : index
    %c0_0 = arith.constant 0 : index
    %0 = vector.load %arg2[%c0, %c0_0] : memref<32x8xf32, #tpu.memory_space<vmem>>, vector<32x1xf32>
    %c0_1 = arith.constant 0 : index
    %c1 = arith.constant 1 : index
    %1 = vector.load %arg2[%c0_1, %c1] : memref<32x8xf32, #tpu.memory_space<vmem>>, vector<32x1xf32>
    %c0_2 = arith.constant 0 : index
    %c2 = arith.constant 2 : index
    %2 = vector.load %arg2[%c0_2, %c2] : memref<32x8xf32, #tpu.memory_space<vmem>>, vector<32x1xf32>
    %c0_3 = arith.constant 0 : index
    %c3 = arith.constant 3 : index
    %3 = vector.load %arg2[%c0_3, %c3] : memref<32x8xf32, #tpu.memory_space<vmem>>, vector<32x1xf32>
    %c0_4 = arith.constant 0 : index
    %c4 = arith.constant 4 : index
    %4 = vector.load %arg2[%c0_4, %c4] : memref<32x8xf32, #tpu.memory_space<vmem>>, vector<1x1xf32>
    %c0_5 = arith.constant 0 : index
    %c0_6 = arith.constant 0 : index
    %5 = vector.load %arg3[%c0_5, %c0_6] : memref<32x32xf32, #tpu.memory_space<vmem>>, vector<32x32xf32>
    %6 = vector.shape_cast %0 : vector<32x1xf32> to vector<32x1xf32>
    %7 = vector.broadcast %6 : vector<32x1xf32> to vector<32x256xf32>
    %8 = vector.shape_cast %1 : vector<32x1xf32> to vector<32x1xf32>
    %9 = vector.broadcast %8 : vector<32x1xf32> to vector<32x256xf32>
    %10 = vector.shape_cast %2 : vector<32x1xf32> to vector<32x1xf32>
    %11 = vector.broadcast %10 : vector<32x1xf32> to vector<32x256xf32>
    %12 = vector.shape_cast %3 : vector<32x1xf32> to vector<32x1xf32>
    %13 = vector.broadcast %12 : vector<32x1xf32> to vector<32x256xf32>
    %c0_7 = arith.constant 0 : index
    %c0_8 = arith.constant 0 : index
    %14 = vector.load %arg1[%c0_7, %c0_8] : memref<1x256xf32, #tpu.memory_space<vmem>>, vector<1x256xf32>
    %15 = vector.broadcast %14 : vector<1x256xf32> to vector<32x256xf32>
    %16 = arith.mulf %7, %15 : vector<32x256xf32>
    %17 = arith.addf %16, %9 : vector<32x256xf32>
    %cst = arith.constant 0.000000e+00 : f32
    %18 = vector.broadcast %cst : f32 to vector<32x256xf32>
    %19 = arith.maximumf %17, %18 : vector<32x256xf32>
    %cst_9 = arith.constant dense<0.000000e+00> : vector<32x256xf32>
    %20 = tpu.matmul %5, %19, %cst_9 {dimension_numbers = #tpu.dot_dimension_numbers<[1], [0], [0], [1], [0, 0, 1, 1], [], []>} : vector<32x32xf32>, vector<32x256xf32>, vector<32x256xf32> -> vector<32x256xf32>
    %21 = arith.addf %20, %11 : vector<32x256xf32>
    %cst_10 = arith.constant 0.000000e+00 : f32
    %22 = vector.broadcast %cst_10 : f32 to vector<32x256xf32>
    %23 = arith.maximumf %21, %22 : vector<32x256xf32>
    %24 = arith.mulf %23, %13 : vector<32x256xf32>
    %cst_11 = arith.constant dense<0.000000e+00> : vector<256xf32>
    %25 = vector.multi_reduction <add>, %24, %cst_11 [0] : vector<32x256xf32> to vector<256xf32>
    %26 = vector.shape_cast %25 : vector<256xf32> to vector<1x256xf32>
    %27 = vector.broadcast %4 : vector<1x1xf32> to vector<1x256xf32>
    %28 = arith.addf %26, %27 : vector<1x256xf32>
    %c0_12 = arith.constant 0 : index
    %c0_13 = arith.constant 0 : index
    %29 = vector.load %arg4[%c0_12, %c0_13] : memref<1x256xf32, #tpu.memory_space<vmem>>, vector<1x256xf32>
    tpu.vector_store %arg4[%c0_12, %c0_13], %28 {strides = array<i32>} : memref<1x256xf32, #tpu.memory_space<vmem>>, vector<1x256xf32>,
    return
  }
  func.func @transform_0(%arg0: i32) -> (i32, i32) {
    %c0_i32 = arith.constant 0 : i32
    %c0_i32_0 = arith.constant 0 : i32
    return %c0_i32, %arg0 : i32, i32
  }
  func.func @transform_1(%arg0: i32) -> (i32, i32) {
    %c0_i32 = arith.constant 0 : i32
    %c0_i32_0 = arith.constant 0 : i32
    %c0_i32_1 = arith.constant 0 : i32
    return %c0_i32, %c0_i32_0 : i32, i32
  }
  func.func @transform_2(%arg0: i32) -> (i32, i32) {
    %c0_i32 = arith.constant 0 : i32
    %c0_i32_0 = arith.constant 0 : i32
    %c0_i32_1 = arith.constant 0 : i32
    return %c0_i32, %c0_i32_0 : i32, i32
  }
  func.func @transform_3(%arg0: i32) -> (i32, i32) {
    %c0_i32 = arith.constant 0 : i32
    %c0_i32_0 = arith.constant 0 : i32
    return %c0_i32, %arg0 : i32, i32
  }
}

</mosaic_0001>

<bundles_post_ra>
// kernel: tpu_custom_call.1
= control target key start
LH: loop header
LB: loop body
LE: loop exit
PB: predicated region body
PF: predicated region fallthrough
CT: control target
= control target key end

     0   :  { %v361_v1 = vmov 1   ;;  %v362_v2 = vmov 0   ;;  %s433_s0 = inlined_call_operand.vmem [shape: f32[1,256], index: 0, kind: input, shape index: {}]   ;;  %s434_s1 = inlined_call_operand.vmem [shape: f32[32,8], index: 1, kind: input, shape index: {}]   ;;  %s435_s2 = inlined_call_operand.vmem [shape: f32[32,32], index: 2, kind: input, shape index: {}]   ;;  %s436_s3 = inlined_call_operand.hbm [shape: f32[1,256], index: 3, kind: output, shape index: {}]  }
   0x1   :  { %v18_v0 = vld [vmem:[%s434_s1 + $0x18] sm:$0xff]  ;;  %329 = vset.pattern.permute.xlu1 %v361_v1  ;;  %328 = vset.pattern.permute.xlu0 %v362_v2 }
   0x2   :  { %8 = vsyncpa [#allocation3], 0  ;;  %57 = vperm.xlu1 %329, %v18_v0   ;;  %41 = vperm.xlu0 %328, %v18_v0   ;;  %v17_v3 = vld [vmem:[%s434_s1 + $0x10] sm:$0xff]  ;;  %v16_v4 = vld [vmem:[%s434_s1 + $0x8] sm:$0xff]  ;;  %v363_v6 = vmov 0.0   ;;  %v364_v7 = vmov 2   ;;  %v94_v11 = vlaneseq }
   0x3   :  { %v15_v5 = vld [vmem:[%s434_s1] sm:$0xff]  ;;  %205 = vmatprep.mubr.f32.mxu0 %v363_v6  ;;  %217 = vmatprep.mubr.f32.mxu1 %v363_v6  ;;  %v365_v8 = vmov 3   ;;  %v366_v9 = vmov 4   ;;  %vm128_vm0 = vcmask 261120   ;;  %v22_v51 = vld [vmem:[%s435_s2 + $0x10] sm:$0xff]  ;;  %v21_v52 = vld [vmem:[%s435_s2 + $0x8] sm:$0xff] }
   0x4   :  { %v19_v10 = vld [vmem:[%s434_s1] sm:$0x1]  ;;  %v407_v12 = vshrl.u32 %v94_v11, 7  ;;  %v23_v53 = vld [vmem:[%s435_s2 + $0x18] sm:$0xff]  ;;  %vm291_vm1 = vcmp.lt.s32.totalorder %v94_v11, 256 }
   0x5   :  { %v92_v15 = vld [vmem:[%s433_s0] sm:$0x3] }
   0x6   :  { %330 = vset.pattern.permute.xlu1 %v362_v2  ;;  %36 = vperm.xlu0 %328, %v17_v3   ;;  %v96_v13 = vsub.s32 0, %v407_v12  ;;  %v100_v14 = vsub.s32 1, %v407_v12  ;;  %v20_v50 = vld [vmem:[%s435_s2] sm:$0xff]  ;;  %s368_s2 = smov [#allocation2]  }
   0x7   :  { %31 = vperm.xlu1 %330, %v16_v4   ;;  %s300_s30 = sshll.u32 %s368_s2, 4  ;;  %s301_s30 = int_to_ptr.vmem [resolvable:$true] %s300_s30 }
   0x8   :  { %v97_v16 = vrot.slane %v92_v15, %v96_v13  ;;  %v101_v17 = vrot.slane %v92_v15, %v100_v14  ;;  %s339_s4 = scalar_lea.vmem %s301_s30, 32  ;;  %p344_p1 = scmp.lt.s32.totalorder %s301_s30, %s301_s30 }
   0x9   :  { %p340_p0 = scmp.ne.s32.totalorder %s301_s30, %s339_s4  ;;  %p345_p2 = scmp.lt.s32.totalorder %s339_s4, %s339_s4 }
   0xa   :  { %331 = vset.pattern.permute.xlu0 %v361_v1 }
   0xb   :  { %53 = vperm.xlu0 %331, %v17_v3   ;;  %26 = vperm.xlu1 %330, %v15_v5   ;;  %p346_p3 = por %p345_p2, %p344_p1 }
   0xd   :  { %p347_p4 = pnand %p346_p3, %p340_p0 }
   0xf   :  { %45 = vperm.xlu0 %331, %v15_v5   ;;  %332 = vset.pattern.permute.xlu1 %v361_v1 }
  0x10   :  { %49 = vperm.xlu1 %332, %v16_v4  }
  0x13   :  { %334 = vset.pattern.permute.xlu0 %v364_v7 }
  0x14   :  { %333 = vset.pattern.permute.xlu1 %v364_v7  ;;  %65 = vperm.xlu0 %334, %v16_v4  }
  0x15   :  { %61 = vperm.xlu1 %333, %v15_v5  }
  0x18   :  { %335 = vset.pattern.permute.xlu0 %v365_v8 }
  0x19   :  { %69 = vperm.xlu1 %333, %v17_v3   ;;  %77 = vperm.xlu0 %335, %v15_v5  }
  0x1d   :  { %73 = vperm.xlu1 %333, %v18_v0   ;;  %89 = vperm.xlu0 %335, %v18_v0  }
  0x21   :  { %336 = vset.pattern.permute.xlu1 %v365_v8  ;;  %338 = vset.pattern.permute.xlu0 %v366_v9 }
  0x22   :  { %81 = vperm.xlu1 %336, %v16_v4  }
  0x26   :  { %85 = vperm.xlu1 %336, %v17_v3  }
  0x2a   :  { %337 = vset.pattern.permute.xlu1 %v366_v9 }
  0x2b   :  { %266 = vperm.xlu1 %337, %v19_v10  }
  0x7d   :  { %v58_v18 = vpop.permute.xlu1 %57  ;;  %v42_v19 = vpop.permute.xlu0 %41 }
  0x7e   :  { %v110_v20 = vmul.f32 %v97_v16, %v42_v19  ;;  %v111_v21 = vmul.f32 %v101_v17, %v42_v19 }
  0x80   :  { %v119_v22 = vadd.f32 %v111_v21, %v58_v18  ;;  %v118_v23 = vadd.f32 %v110_v20, %v58_v18 }
  0x81   :  { %v37_v24 = vpop.permute.xlu0 %36 }
  0x82   :  { %v32_v25 = vpop.permute.xlu1 %31  ;;  %v127_v26 = vmax.f32 %v119_v22, 0.0  ;;  %v126_v27 = vmax.f32 %v118_v23, 0.0  ;;  %v108_v28 = vmul.f32 %v97_v16, %v37_v24  ;;  %v109_v29 = vmul.f32 %v101_v17, %v37_v24 }
  0x83   :  { %v106_v36 = vmul.f32 %v97_v16, %v32_v25  ;;  %v107_v37 = vmul.f32 %v101_v17, %v32_v25 }
  0x84   :  { %165 = vmatprep.subr.mxu0 %v127_v26  ;;  %312 = vmatprep.subr.mxu1 %v127_v26 }
  0x85   :  { %166 = vmatpush1.msra.mxu0 %v126_v27  ;;  %316 = vmatpush1.msra.mxu1 %v126_v27 }
  0x86   :  { %v54_v30 = vpop.permute.xlu0 %53  ;;  %v27_v31 = vpop.permute.xlu1 %26 }
  0x87   :  { %v116_v32 = vadd.f32 %v108_v28, %v54_v30  ;;  %v117_v33 = vadd.f32 %v109_v29, %v54_v30  ;;  %v105_v38 = vmul.f32 %v101_v17, %v27_v31  ;;  %v104_v40 = vmul.f32 %v97_v16, %v27_v31 }
  0x89   :  { %v124_v34 = vmax.f32 %v116_v32, 0.0  ;;  %v125_v35 = vmax.f32 %v117_v33, 0.0 }
  0x8a   :  { %v46_v39 = vpop.permute.xlu0 %45 }
  0x8b   :  { %167 = vmatprep.subr.mxu0 %v125_v35  ;;  %313 = vmatprep.subr.mxu1 %v125_v35  ;;  %v50_v41 = vpop.permute.xlu1 %49  ;;  %v113_v42 = vadd.f32 %v105_v38, %v46_v39  ;;  %v112_v45 = vadd.f32 %v104_v40, %v46_v39 }
  0x8c   :  { %v114_v43 = vadd.f32 %v106_v36, %v50_v41  ;;  %v115_v44 = vadd.f32 %v107_v37, %v50_v41  ;;  %168 = vmatpush1.msra.mxu0 %v124_v34  ;;  %317 = vmatpush1.msra.mxu1 %v124_v34 }
  0x8d   :  { %v121_v48 = vmax.f32 %v113_v42, 0.0  ;;  %v120_v49 = vmax.f32 %v112_v45, 0.0  ;;  %v367_v45 = vmov 1966171168  }
  0x8e   :  { %v122_v46 = vmax.f32 %v114_v43, 0.0  ;;  %v123_v47 = vmax.f32 %v115_v44, 0.0 }
  0x8f   :  { %v66_v57 = vpop.permute.xlu0 %65 }
  0x90   :  { %169 = vmatprep.subr.mxu0 %v123_v47  ;;  %314 = vmatprep.subr.mxu1 %v123_v47  ;;  %v62_v54 = vpop.permute.xlu1 %61 }
  0x91   :  { %170 = vmatpush1.msra.mxu0 %v122_v46  ;;  %318 = vmatpush1.msra.mxu1 %v122_v46  ;;  %v275_v46 = vunpack.c.l.s4 %v367_v45 }
  0x92   :  { %171 = vmatprep.subr.mxu0 %v121_v48  ;;  %315 = vmatprep.subr.mxu1 %v121_v48 }
  0x93   :  { %172 = vmatpush1.msra.mxu0 %v120_v49  ;;  %319 = vmatpush1.msra.mxu1 %v120_v49 }
  0x94   :  { %308 = vmatmul.mubr.msk.f32.vlgmr.msra.gmra.mxu0 %vm128_vm0, %v20_v50  ;;  %310 = vmatmul.mubr.msk.f32.vlgmr.msra.gmra.mxu1 %vm128_vm0, %v22_v51  ;;  %v70_v55 = vpop.permute.xlu1 %69  ;;  %v78_v2 = vpop.permute.xlu0 %77  ;;  %v276_v51 = vunpack.c.0.s8 %v275_v46 }
  0x95   :  { %211 = vmatprep.mubr.f32.mxu0 %v363_v6  ;;  %223 = vmatprep.mubr.f32.mxu1 %v363_v6 }
  0x98   :  { %309 = vmatmul.mubr.msk.f32.gmra.mxu0 %vm128_vm0, %v21_v52  ;;  %311 = vmatmul.mubr.msk.f32.gmra.mxu1 %vm128_vm0, %v23_v53  ;;  %v74_v56 = vpop.permute.xlu1 %73  ;;  %v90_v25 = vpop.permute.xlu0 %89 }
  0x9d   :  { %v82_v61 = vpop.permute.xlu1 %81 }
  0xa1   :  { %v86_v16 = vpop.permute.xlu1 %85 }
  0xa6   :  { %v267_v52 = vpop.permute.xlu1 %266 }
 0x154   :  { %v207_v58 = vpop.f32.mrf.mxu0  ;;  %v219_v59 = vpop.f32.mrf.mxu1 }
 0x155   :  { %v208_v60 = vadd.f32 %v207_v58, %v62_v54  ;;  %v220_v62 = vadd.f32 %v219_v59, %v70_v55 }
 0x156   :  { %v209_v63 = vpop.f32.mrf.mxu0  ;;  %v221_v0 = vpop.f32.mrf.mxu1 }
 0x157   :  { %v210_v1 = vadd.f32 %v209_v63, %v62_v54  ;;  %v222_v3 = vadd.f32 %v221_v0, %v70_v55  ;;  %v230_v6 = vmax.f32 %v208_v60, 0.0  ;;  %v234_v8 = vmax.f32 %v220_v62, 0.0 }
 0x158   :  { %v213_v4 = vpop.f32.mrf.mxu0  ;;  %v225_v5 = vpop.f32.mrf.mxu1  ;;  %v279_v54 = vsub.s32 %v276_v51, %v407_v12 }
 0x159   :  { %v214_v7 = vadd.f32 %v213_v4, %v66_v57  ;;  %v226_v9 = vadd.f32 %v225_v5, %v74_v56  ;;  %v231_v14 = vmax.f32 %v210_v1, 0.0  ;;  %v235_v18 = vmax.f32 %v222_v3, 0.0 }
 0x15a   :  { %v215_v10 = vpop.f32.mrf.mxu0  ;;  %v227_v13 = vpop.f32.mrf.mxu1  ;;  %v238_v20 = vmul.f32 %v230_v6, %v78_v2  ;;  %v242_v24 = vmul.f32 %v234_v8, %v86_v16 }
 0x15b   :  { %v232_v15 = vmax.f32 %v214_v7, 0.0  ;;  %v216_v17 = vadd.f32 %v215_v10, %v66_v57  ;;  %v228_v19 = vadd.f32 %v227_v13, %v74_v56  ;;  %v236_v22 = vmax.f32 %v226_v9, 0.0 }
 0x15c   :  { %v239_v26 = vmul.f32 %v231_v14, %v78_v2  ;;  %v243_v30 = vmul.f32 %v235_v18, %v86_v16 }
 0x15d   :  { %v240_v21 = vmul.f32 %v232_v15, %v82_v61  ;;  %v233_v23 = vmax.f32 %v216_v17, 0.0  ;;  %v237_v29 = vmax.f32 %v228_v19, 0.0  ;;  %v244_v33 = vmul.f32 %v236_v22, %v90_v25 }
 0x15f   :  { %v246_v27 = vadd.f32 %v240_v21, %v238_v20  ;;  %v241_v28 = vmul.f32 %v233_v23, %v82_v61  ;;  %v245_v34 = vmul.f32 %v237_v29, %v90_v25 }
 0x161   :  { %v247_v31 = vadd.f32 %v246_v27, %v242_v24  ;;  %v255_v32 = vadd.f32 %v241_v28, %v239_v26 }
 0x163   :  { %v248_v35 = vadd.f32 %v247_v31, %v244_v33  ;;  %v256_v36 = vadd.f32 %v255_v32, %v243_v30 }
 0x165   :  { %v249_v37 = vrot.slane %v248_v35, 4  ;;  %v257_v38 = vadd.f32 %v256_v36, %v245_v34 }
 0x167   :  { %v250_v39 = vadd.f32 %v249_v37, %v248_v35  ;;  %v258_v40 = vrot.slane %v257_v38, 4 }
 0x169   :  { %v259_v41 = vadd.f32 %v258_v40, %v257_v38  ;;  %v251_v42 = vrot.slane %v250_v39, 2 }
 0x16b   :  { %v252_v43 = vadd.f32 %v251_v42, %v250_v39  ;;  %v260_v44 = vrot.slane %v259_v41, 2 }
 0x16d   :  { %v253_v47 = vrot.slane %v252_v43, 1  ;;  %v261_v48 = vadd.f32 %v260_v44, %v259_v41 }
 0x16f   :  { %v254_v49 = vadd.f32 %v253_v47, %v252_v43  ;;  %v262_v50 = vrot.slane %v261_v48, 1 }
 0x171   :  { %v263_v53 = vadd.f32 %v262_v50, %v261_v48  ;;  %v269_v55 = vadd.f32 %v267_v52, %v254_v49 }
 0x173   :  { %v270_v56 = vadd.f32 %v267_v52, %v263_v53 }
 0x175   :  { %v273_v57 = vcombine.low %v269_v55, %v270_v56 }
 0x177   :  { %v280_v58 = vrot.slane %v273_v57, %v279_v54 }
 0x179   :  { %v287_v59 = vrot.slane %v280_v58, %v279_v54 }
 0x17b   :  { %293 = vst.msk [vmem:[#allocation2] sm:$0x3] %vm291_vm1, %v287_v59 }
 0x17c   :  { %350 = shalt.err (!%p347_p4)
}
 0x17d   :  { %303 = dma.vmem_to_hbm [thread:$0]  %s301_s30, 32, %s436_s3, [#allocation3]  }
 0x17e   :  { %359 = dma.done.wait [#allocation3], 32  }
 0x17f   :  { %360 = vsyncadd [#allocation3], 4294967264 }
 0x180   :  { %307 = vsyncpa [#allocation3], 1 }

// kernel: tpu_custom_call.1
= control target key start
LH: loop header
LB: loop body
LE: loop exit
PB: predicated region body
PF: predicated region fallthrough
CT: control target
= control target key end

     0   :  { %v361_v1 = vmov 1   ;;  %v362_v2 = vmov 0   ;;  %s433_s0 = inlined_call_operand.vmem [shape: f32[1,256], index: 0, kind: input, shape index: {}]   ;;  %s434_s1 = inlined_call_operand.vmem [shape: f32[32,8], index: 1, kind: input, shape index: {}]   ;;  %s435_s2 = inlined_call_operand.vmem [shape: f32[32,32], index: 2, kind: input, shape index: {}]   ;;  %s436_s3 = inlined_call_operand.hbm [shape: f32[1,256], index: 3, kind: output, shape index: {}]  }
   0x1   :  { %v18_v0 = vld [vmem:[%s434_s1 + $0x18] sm:$0xff]  ;;  %329 = vset.pattern.permute.xlu1 %v361_v1  ;;  %328 = vset.pattern.permute.xlu0 %v362_v2 }
   0x2   :  { %8 = vsyncpa [#allocation3], 0  ;;  %57 = vperm.xlu1 %329, %v18_v0   ;;  %41 = vperm.xlu0 %328, %v18_v0   ;;  %v17_v3 = vld [vmem:[%s434_s1 + $0x10] sm:$0xff]  ;;  %v16_v4 = vld [vmem:[%s434_s1 + $0x8] sm:$0xff]  ;;  %v363_v6 = vmov 0.0   ;;  %v364_v7 = vmov 2   ;;  %v94_v11 = vlaneseq }
   0x3   :  { %v15_v5 = vld [vmem:[%s434_s1] sm:$0xff]  ;;  %205 = vmatprep.mubr.f32.mxu0 %v363_v6  ;;  %217 = vmatprep.mubr.f32.mxu1 %v363_v6  ;;  %v365_v8 = vmov 3   ;;  %v366_v9 = vmov 4   ;;  %vm128_vm0 = vcmask 261120   ;;  %v22_v51 = vld [vmem:[%s435_s2 + $0x10] sm:$0xff]  ;;  %v21_v52 = vld [vmem:[%s435_s2 + $0x8] sm:$0xff] }
   0x4   :  { %v19_v10 = vld [vmem:[%s434_s1] sm:$0x1]  ;;  %v407_v12 = vshrl.u32 %v94_v11, 7  ;;  %v23_v53 = vld [vmem:[%s435_s2 + $0x18] sm:$0xff]  ;;  %vm291_vm1 = vcmp.lt.s32.totalorder %v94_v11, 256 }
   0x5   :  { %v92_v15 = vld [vmem:[%s433_s0] sm:$0x3] }
   0x6   :  { %330 = vset.pattern.permute.xlu1 %v362_v2  ;;  %36 = vperm.xlu0 %328, %v17_v3   ;;  %v96_v13 = vsub.s32 0, %v407_v12  ;;  %v100_v14 = vsub.s32 1, %v407_v12  ;;  %v20_v50 = vld [vmem:[%s435_s2] sm:$0xff]  ;;  %s368_s2 = smov [#allocation2]  }
   0x7   :  { %31 = vperm.xlu1 %330, %v16_v4   ;;  %s300_s30 = sshll.u32 %s368_s2, 4  ;;  %s301_s30 = int_to_ptr.vmem [resolvable:$true] %s300_s30 }
   0x8   :  { %v97_v16 = vrot.slane %v92_v15, %v96_v13  ;;  %v101_v17 = vrot.slane %v92_v15, %v100_v14  ;;  %s339_s4 = scalar_lea.vmem %s301_s30, 32  ;;  %p344_p1 = scmp.lt.s32.totalorder %s301_s30, %s301_s30 }
   0x9   :  { %p340_p0 = scmp.ne.s32.totalorder %s301_s30, %s339_s4  ;;  %p345_p2 = scmp.lt.s32.totalorder %s339_s4, %s339_s4 }
   0xa   :  { %331 = vset.pattern.permute.xlu0 %v361_v1 }
   0xb   :  { %53 = vperm.xlu0 %331, %v17_v3   ;;  %26 = vperm.xlu1 %330, %v15_v5   ;;  %p346_p3 = por %p345_p2, %p344_p1 }
   0xd   :  { %p347_p4 = pnand %p346_p3, %p340_p0 }
   0xf   :  { %45 = vperm.xlu0 %331, %v15_v5   ;;  %332 = vset.pattern.permute.xlu1 %v361_v1 }
  0x10   :  { %49 = vperm.xlu1 %332, %v16_v4  }
  0x13   :  { %334 = vset.pattern.permute.xlu0 %v364_v7 }
  0x14   :  { %333 = vset.pattern.permute.xlu1 %v364_v7  ;;  %65 = vperm.xlu0 %334, %v16_v4  }
  0x15   :  { %61 = vperm.xlu1 %333, %v15_v5  }
  0x18   :  { %335 = vset.pattern.permute.xlu0 %v365_v8 }
  0x19   :  { %69 = vperm.xlu1 %333, %v17_v3   ;;  %77 = vperm.xlu0 %335, %v15_v5  }
  0x1d   :  { %73 = vperm.xlu1 %333, %v18_v0   ;;  %89 = vperm.xlu0 %335, %v18_v0  }
  0x21   :  { %336 = vset.pattern.permute.xlu1 %v365_v8  ;;  %338 = vset.pattern.permute.xlu0 %v366_v9 }
  0x22   :  { %81 = vperm.xlu1 %336, %v16_v4  }
  0x26   :  { %85 = vperm.xlu1 %336, %v17_v3  }
  0x2a   :  { %337 = vset.pattern.permute.xlu1 %v366_v9 }
  0x2b   :  { %266 = vperm.xlu1 %337, %v19_v10  }
  0x7d   :  { %v58_v18 = vpop.permute.xlu1 %57  ;;  %v42_v19 = vpop.permute.xlu0 %41 }
  0x7e   :  { %v110_v20 = vmul.f32 %v97_v16, %v42_v19  ;;  %v111_v21 = vmul.f32 %v101_v17, %v42_v19 }
  0x80   :  { %v119_v22 = vadd.f32 %v111_v21, %v58_v18  ;;  %v118_v23 = vadd.f32 %v110_v20, %v58_v18 }
  0x81   :  { %v37_v24 = vpop.permute.xlu0 %36 }
  0x82   :  { %v32_v25 = vpop.permute.xlu1 %31  ;;  %v127_v26 = vmax.f32 %v119_v22, 0.0  ;;  %v126_v27 = vmax.f32 %v118_v23, 0.0  ;;  %v108_v28 = vmul.f32 %v97_v16, %v37_v24  ;;  %v109_v29 = vmul.f32 %v101_v17, %v37_v24 }
  0x83   :  { %v106_v36 = vmul.f32 %v97_v16, %v32_v25  ;;  %v107_v37 = vmul.f32 %v101_v17, %v32_v25 }
  0x84   :  { %165 = vmatprep.subr.mxu0 %v127_v26  ;;  %312 = vmatprep.subr.mxu1 %v127_v26 }
  0x85   :  { %166 = vmatpush1.msra.mxu0 %v126_v27  ;;  %316 = vmatpush1.msra.mxu1 %v126_v27 }
  0x86   :  { %v54_v30 = vpop.permute.xlu0 %53  ;;  %v27_v31 = vpop.permute.xlu1 %26 }
  0x87   :  { %v116_v32 = vadd.f32 %v108_v28, %v54_v30  ;;  %v117_v33 = vadd.f32 %v109_v29, %v54_v30  ;;  %v105_v38 = vmul.f32 %v101_v17, %v27_v31  ;;  %v104_v40 = vmul.f32 %v97_v16, %v27_v31 }
  0x89   :  { %v124_v34 = vmax.f32 %v116_v32, 0.0  ;;  %v125_v35 = vmax.f32 %v117_v33, 0.0 }
  0x8a   :  { %v46_v39 = vpop.permute.xlu0 %45 }
  0x8b   :  { %167 = vmatprep.subr.mxu0 %v125_v35  ;;  %313 = vmatprep.subr.mxu1 %v125_v35  ;;  %v50_v41 = vpop.permute.xlu1 %49  ;;  %v113_v42 = vadd.f32 %v105_v38, %v46_v39  ;;  %v112_v45 = vadd.f32 %v104_v40, %v46_v39 }
  0x8c   :  { %v114_v43 = vadd.f32 %v106_v36, %v50_v41  ;;  %v115_v44 = vadd.f32 %v107_v37, %v50_v41  ;;  %168 = vmatpush1.msra.mxu0 %v124_v34  ;;  %317 = vmatpush1.msra.mxu1 %v124_v34 }
  0x8d   :  { %v121_v48 = vmax.f32 %v113_v42, 0.0  ;;  %v120_v49 = vmax.f32 %v112_v45, 0.0  ;;  %v367_v45 = vmov 1966171168  }
  0x8e   :  { %v122_v46 = vmax.f32 %v114_v43, 0.0  ;;  %v123_v47 = vmax.f32 %v115_v44, 0.0 }
  0x8f   :  { %v66_v57 = vpop.permute.xlu0 %65 }
  0x90   :  { %169 = vmatprep.subr.mxu0 %v123_v47  ;;  %314 = vmatprep.subr.mxu1 %v123_v47  ;;  %v62_v54 = vpop.permute.xlu1 %61 }
  0x91   :  { %170 = vmatpush1.msra.mxu0 %v122_v46  ;;  %318 = vmatpush1.msra.mxu1 %v122_v46  ;;  %v275_v46 = vunpack.c.l.s4 %v367_v45 }
  0x92   :  { %171 = vmatprep.subr.mxu0 %v121_v48  ;;  %315 = vmatprep.subr.mxu1 %v121_v48 }
  0x93   :  { %172 = vmatpush1.msra.mxu0 %v120_v49  ;;  %319 = vmatpush1.msra.mxu1 %v120_v49 }
  0x94   :  { %308 = vmatmul.mubr.msk.f32.vlgmr.msra.gmra.mxu0 %vm128_vm0, %v20_v50  ;;  %310 = vmatmul.mubr.msk.f32.vlgmr.msra.gmra.mxu1 %vm128_vm0, %v22_v51  ;;  %v70_v55 = vpop.permute.xlu1 %69  ;;  %v78_v2 = vpop.permute.xlu0 %77  ;;  %v276_v51 = vunpack.c.0.s8 %v275_v46 }
  0x95   :  { %211 = vmatprep.mubr.f32.mxu0 %v363_v6  ;;  %223 = vmatprep.mubr.f32.mxu1 %v363_v6 }
  0x98   :  { %309 = vmatmul.mubr.msk.f32.gmra.mxu0 %vm128_vm0, %v21_v52  ;;  %311 = vmatmul.mubr.msk.f32.gmra.mxu1 %vm128_vm0, %v23_v53  ;;  %v74_v56 = vpop.permute.xlu1 %73  ;;  %v90_v25 = vpop.permute.xlu0 %89 }
  0x9d   :  { %v82_v61 = vpop.permute.xlu1 %81 }
  0xa1   :  { %v86_v16 = vpop.permute.xlu1 %85 }
  0xa6   :  { %v267_v52 = vpop.permute.xlu1 %266 }
 0x154   :  { %v207_v58 = vpop.f32.mrf.mxu0  ;;  %v219_v59 = vpop.f32.mrf.mxu1 }
 0x155   :  { %v208_v60 = vadd.f32 %v207_v58, %v62_v54  ;;  %v220_v62 = vadd.f32 %v219_v59, %v70_v55 }
 0x156   :  { %v209_v63 = vpop.f32.mrf.mxu0  ;;  %v221_v0 = vpop.f32.mrf.mxu1 }
 0x157   :  { %v210_v1 = vadd.f32 %v209_v63, %v62_v54  ;;  %v222_v3 = vadd.f32 %v221_v0, %v70_v55  ;;  %v230_v6 = vmax.f32 %v208_v60, 0.0  ;;  %v234_v8 = vmax.f32 %v220_v62, 0.0 }
 0x158   :  { %v213_v4 = vpop.f32.mrf.mxu0  ;;  %v225_v5 = vpop.f32.mrf.mxu1  ;;  %v279_v54 = vsub.s32 %v276_v51, %v407_v12 }
 0x159   :  { %v214_v7 = vadd.f32 %v213_v4, %v66_v57  ;;  %v226_v9 = vadd.f32 %v225_v5, %v74_v56  ;;  %v231_v14 = vmax.f32 %v210_v1, 0.0  ;;  %v235_v18 = vmax.f32 %v222_v3, 0.0 }
 0x15a   :  { %v215_v10 = vpop.f32.mrf.mxu0  ;;  %v227_v13 = vpop.f32.mrf.mxu1  ;;  %v238_v20 = vmul.f32 %v230_v6, %v78_v2  ;;  %v242_v24 = vmul.f32 %v234_v8, %v86_v16 }
 0x15b   :  { %v232_v15 = vmax.f32 %v214_v7, 0.0  ;;  %v216_v17 = vadd.f32 %v215_v10, %v66_v57  ;;  %v228_v19 = vadd.f32 %v227_v13, %v74_v56  ;;  %v236_v22 = vmax.f32 %v226_v9, 0.0 }
 0x15c   :  { %v239_v26 = vmul.f32 %v231_v14, %v78_v2  ;;  %v243_v30 = vmul.f32 %v235_v18, %v86_v16 }
 0x15d   :  { %v240_v21 = vmul.f32 %v232_v15, %v82_v61  ;;  %v233_v23 = vmax.f32 %v216_v17, 0.0  ;;  %v237_v29 = vmax.f32 %v228_v19, 0.0  ;;  %v244_v33 = vmul.f32 %v236_v22, %v90_v25 }
 0x15f   :  { %v246_v27 = vadd.f32 %v240_v21, %v238_v20  ;;  %v241_v28 = vmul.f32 %v233_v23, %v82_v61  ;;  %v245_v34 = vmul.f32 %v237_v29, %v90_v25 }
 0x161   :  { %v247_v31 = vadd.f32 %v246_v27, %v242_v24  ;;  %v255_v32 = vadd.f32 %v241_v28, %v239_v26 }
 0x163   :  { %v248_v35 = vadd.f32 %v247_v31, %v244_v33  ;;  %v256_v36 = vadd.f32 %v255_v32, %v243_v30 }
 0x165   :  { %v249_v37 = vrot.slane %v248_v35, 4  ;;  %v257_v38 = vadd.f32 %v256_v36, %v245_v34 }
 0x167   :  { %v250_v39 = vadd.f32 %v249_v37, %v248_v35  ;;  %v258_v40 = vrot.slane %v257_v38, 4 }
 0x169   :  { %v259_v41 = vadd.f32 %v258_v40, %v257_v38  ;;  %v251_v42 = vrot.slane %v250_v39, 2 }
 0x16b   :  { %v252_v43 = vadd.f32 %v251_v42, %v250_v39  ;;  %v260_v44 = vrot.slane %v259_v41, 2 }
 0x16d   :  { %v253_v47 = vrot.slane %v252_v43, 1  ;;  %v261_v48 = vadd.f32 %v260_v44, %v259_v41 }
 0x16f   :  { %v254_v49 = vadd.f32 %v253_v47, %v252_v43  ;;  %v262_v50 = vrot.slane %v261_v48, 1 }
 0x171   :  { %v263_v53 = vadd.f32 %v262_v50, %v261_v48  ;;  %v269_v55 = vadd.f32 %v267_v52, %v254_v49 }
 0x173   :  { %v270_v56 = vadd.f32 %v267_v52, %v263_v53 }
 0x175   :  { %v273_v57 = vcombine.low %v269_v55, %v270_v56 }
 0x177   :  { %v280_v58 = vrot.slane %v273_v57, %v279_v54 }
 0x179   :  { %v287_v59 = vrot.slane %v280_v58, %v279_v54 }
 0x17b   :  { %293 = vst.msk [vmem:[#allocation2] sm:$0x3] %vm291_vm1, %v287_v59 }
 0x17c   :  { %350 = shalt.err (!%p347_p4)
}
 0x17d   :  { %303 = dma.vmem_to_hbm [thread:$0]  %s301_s30, 32, %s436_s3, [#allocation3]  }
 0x17e   :  { %359 = dma.done.wait [#allocation3], 32  }
 0x17f   :  { %360 = vsyncadd [#allocation3], 4294967264 }
 0x180   :  { %307 = vsyncpa [#allocation3], 1 }

</bundles_post_ra>
